<compile_context>
chip_gen: v7x
topology: tpu7x:2x2x1
jax: 0.10.0
libtpu: 0.0.40
codegen_flags: <defaults>
</compile_context>

<pallas_src>
import numpy as np
import jax
import jax.numpy as jnp
from jax.experimental import pallas as pl
from jax.experimental.pallas import tpu as pltpu


def _round_up(x, m):
    return ((x + m - 1) // m) * m


# ----------------------------------------------------------------------------
# Pallas kernel: feature-major 2-layer MLP encode + per-pair dot
#   encode(x) = relu(x @ W1 + b1) @ W2 + b2   (here computed transposed:
#   y_T = W2_fm @ relu(W1_fm @ x_T + b1_col) + b2_col)
#   out[i]    = <encode(sess[p0[i]]), encode(gnn[p1[i]])>
# ----------------------------------------------------------------------------
def _encode_rowdot_kernel(x_ref, w1_ref, b1_ref, w2_ref, b2_ref, o_ref):
    """x_ref: (1, H, 2*TM) feature-major (sess tile | gnn tile) columns.
    w*_ref: (H, H) feature-major weights, b*_ref: (H, 1) float32.
    o_ref : (1, TM) float32, lane-dense per-pair dot products."""
    tm = o_ref.shape[-1]
    x = x_ref[0]                                                   # (H, 2*TM)

    h = jnp.dot(w1_ref[...], x, preferred_element_type=jnp.float32) + b1_ref[...]
    h = jnp.maximum(h, 0.0).astype(x.dtype)                        # compute dtype
    y = jnp.dot(w2_ref[...], h, preferred_element_type=jnp.float32) + b2_ref[...]

    first = y[:, :tm]        # encode(sess_embedding[pair[:,0]])^T
    second = y[:, tm:]       # encode(gnn_sess_embedding[pair[:,1]])^T
    # mm(first, second.T).diag() == column-wise sum over features (sublanes)
    o_ref[...] = jnp.sum(first * second, axis=0, keepdims=True)    # (1, TM) f32


def encode_pairdot(pair_idx, sess_embedding, gnn_sess_embedding, params,
                   tm=2048, compute_dtype=jnp.float32):
    """pair_idx: int [N, 2]; returns [N, 1] dot of the two encoded streams."""
    n = int(pair_idx.shape[0])
    hdim = int(sess_embedding.shape[1])
    itemsize = np.dtype(compute_dtype).itemsize

    # lane-dense tile: multiple of 128, clamped for small problems
    tm = max(128, min(int(tm), _round_up(n, 128)))
    tm = _round_up(tm, 128)
    n_pad = _round_up(n, tm)
    n_tiles = n_pad // tm
    # prefer >= 2 grid steps so v7x's two TensorCores both get work
    if n_tiles == 1 and tm >= 256:
        tm //= 2
        n_pad = _round_up(n, tm)
        n_tiles = n_pad // tm
    two_tm = 2 * tm

    # padded tail gathers row 0; its (discarded) dots are harmless wasted work
    pair_idx = np.asarray(pair_idx)
    idx0 = np.zeros((n_pad,), np.int32)
    idx1 = np.zeros((n_pad,), np.int32)
    idx0[:n] = pair_idx[:, 0].astype(np.int32)
    idx1[:n] = pair_idx[:, 1].astype(np.int32)

    # feature-major params: y_T = W_fm @ x_T + b_col  (biases kept in f32)
    w1 = jnp.asarray(np.asarray(params["w1"]).T, compute_dtype)
    w2 = jnp.asarray(np.asarray(params["w2"]).T, compute_dtype)
    b1 = jnp.asarray(np.asarray(params["b1"]).reshape(hdim, 1), jnp.float32)
    b2 = jnp.asarray(np.asarray(params["b2"]).reshape(hdim, 1), jnp.float32)

    cost = pl.CostEstimate(
        flops=8 * hdim * hdim * n_pad + 4 * hdim * n_pad,
        transcendentals=0,
        bytes_accessed=(2 * n_pad * hdim * itemsize            # gathered tiles
                        + 2 * hdim * hdim * itemsize           # W1, W2
                        + 2 * hdim * 4                         # b1, b2
                        + n_pad * 4))                          # output

    x_block_bytes = hdim * two_tm * itemsize
    vmem_limit = int(min(48 * 1024 * 1024,
                         2 * x_block_bytes + 2 * tm * 4
                         + 4 * hdim * hdim * 4 + 4 * hdim * 4 + (16 << 20)))

    grid_fn = pl.pallas_call(
        _encode_rowdot_kernel,
        out_shape=jax.ShapeDtypeStruct((1, n_pad), jnp.float32),
        grid=(n_tiles,),
        in_specs=[
            pl.BlockSpec((1, hdim, two_tm), lambda i: (i, 0, 0)),   # pair tiles
            pl.BlockSpec((hdim, hdim), lambda i: (0, 0)),           # resident W1
            pl.BlockSpec((hdim, 1), lambda i: (0, 0)),              # resident b1
            pl.BlockSpec((hdim, hdim), lambda i: (0, 0)),           # resident W2
            pl.BlockSpec((hdim, 1), lambda i: (0, 0)),              # resident b2
        ],
        out_specs=pl.BlockSpec((1, tm), lambda i: (0, i)),          # lane-dense
        compiler_params=pltpu.CompilerParams(
            dimension_semantics=("parallel",),
            vmem_limit_bytes=vmem_limit),
        cost_estimate=cost,
    )

    @jax.jit
    def run(sess_emb, gnn_emb, i0, i1, w1_, b1_, w2_, b2_):
        # XLA-side gather + feature-major layout (replaces in-kernel one-hot).
        a_t = jnp.take(sess_emb.astype(compute_dtype).T, i0, axis=1)   # (H, n_pad)
        b_t = jnp.take(gnn_emb.astype(compute_dtype).T, i1, axis=1)    # (H, n_pad)
        a_tiles = a_t.reshape(hdim, n_tiles, tm).transpose(1, 0, 2)    # (T, H, tm)
        b_tiles = b_t.reshape(hdim, n_tiles, tm).transpose(1, 0, 2)
        x = jnp.concatenate([a_tiles, b_tiles], axis=-1)               # (T, H, 2tm)
        out = grid_fn(x, w1_, b1_, w2_, b2_)                           # (1, n_pad)
        return out.reshape(n_pad)[:n]

    out = run(jnp.asarray(sess_embedding), jnp.asarray(gnn_sess_embedding),
              jnp.asarray(idx0), jnp.asarray(idx1), w1, b1, w2, b2)
    return out.reshape(-1, 1)


# ----------------------------------------------------------------------------
# Host-side glue: positive/negative pair construction (data-dependent, host RNG)
# ----------------------------------------------------------------------------
def build_pairs(user_ids, negative_prop, rng):
    user_ids = np.asarray(user_ids)
    n = user_ids.shape[0]

    order = np.argsort(user_ids, kind="stable")
    sorted_ids = user_ids[order]
    uniq, starts = np.unique(sorted_ids, return_index=True)
    ends = np.append(starts[1:], n)
    groups = [order[s:e] for s, e in zip(starts, ends)]

    # positives: all within-user index combinations (vectorized per group)
    pos_list = []
    for g in groups:
        m = g.shape[0]
        if m > 1:
            ii, jj = np.triu_indices(m, k=1)
            pos_list.append(np.stack([g[ii], g[jj]], axis=1))
    positive_index = (np.concatenate(pos_list, axis=0).astype(np.int64)
                      if pos_list else np.zeros((0, 2), np.int64))
    positive = np.concatenate(
        [positive_index, np.ones((positive_index.shape[0], 1), np.int64)], axis=1)

    # matches the original: int(len(positive) + 1 * negative_prop)
    negative_samples = int(positive_index.shape[0] + 1 * negative_prop)
    neg_list, n_neg = [], 0
    while n_neg < negative_samples and uniq.shape[0] > 1:
        u1, u2 = rng.choice(len(uniq), 2, replace=False)
        cart = np.stack(np.meshgrid(groups[u1], groups[u2], indexing="ij"),
                        axis=-1).reshape(-1, 2)
        neg_list.append(cart)
        n_neg += cart.shape[0]
    negative_index = (np.concatenate(neg_list, axis=0) if neg_list
                      else np.zeros((0, 2), np.int64))[:negative_samples]
    negative_index = negative_index.astype(np.int64)
    negative = np.concatenate(
        [negative_index, np.zeros((negative_index.shape[0], 1), np.int64)], axis=1)

    if positive.shape[0] != 0 and negative.shape[0] != 0:
        total = np.concatenate([positive, negative], axis=0)
    elif negative.shape[0] == 0:
        total = positive
    else:
        total = negative

    perm = rng.permutation(total.shape[0])
    return total[perm]


# ----------------------------------------------------------------------------
# Full forward
# ----------------------------------------------------------------------------
def user_identificate_forward(user_ids, sess_embedding, gnn_sess_embedding,
                              params, negative_prop, rng, tm=2048,
                              compute_dtype=jnp.float32):
    total = build_pairs(user_ids, negative_prop, rng)            # [N, 3]
    tgt = jnp.asarray(total[:, 2], dtype=jnp.float32).reshape(-1, 1)
    out = encode_pairdot(total[:, :2], sess_embedding, gnn_sess_embedding,
                         params, tm=tm, compute_dtype=compute_dtype)
    return out, tgt


# pure-NumPy float64 reference of the gather + encode + mm(...).diag() path
def _reference_np(a, b, params):
    w1 = np.asarray(params["w1"], np.float64)
    b1 = np.asarray(params["b1"], np.float64)
    w2 = np.asarray(params["w2"], np.float64)
    b2 = np.asarray(params["b2"], np.float64)

    def encode(x):
        h = np.maximum(x @ w1 + b1, 0.0)
        return h @ w2 + b2

    f, s = encode(a.astype(np.float64)), encode(b.astype(np.float64))
    return np.sum(f * s, axis=-1, keepdims=True)


# JAX reference with matched bf16 casts (same rounding as the bf16 kernel path)
def _reference_cast(a, b, params, dtype):
    w1 = params["w1"].astype(dtype)
    w2 = params["w2"].astype(dtype)

    def encode(x):
        h = jnp.dot(x.astype(dtype), w1,
                    preferred_element_type=jnp.float32) + params["b1"]
        h = jnp.maximum(h, 0.0).astype(dtype)
        return jnp.dot(h, w2, preferred_element_type=jnp.float32) + params["b2"]

    f, s = encode(a), encode(b)
    return jnp.sum(f * s, axis=-1, keepdims=True)


if __name__ == "__main__":
    hidden_size = 32
    negative_prop = 1
    batch = 32                      # 4 users x 8 sessions -> 225 pairs, 2 tiles

    key = jax.random.PRNGKey(0)
    k1, k2, k3, k4, k5, k6 = jax.random.split(key, 6)

    bound = 1.0 / np.sqrt(hidden_size)
    params = {
        # stored pre-transposed: y = x @ W + b
        "w1": jax.random.uniform(k1, (hidden_size, hidden_size),
                                 jnp.float32, -bound, bound),
        "b1": jax.random.uniform(k2, (1, hidden_size),
                                 jnp.float32, -bound, bound),
        "w2": jax.random.uniform(k3, (hidden_size, hidden_size),
                                 jnp.float32, -bound, bound),
        "b2": jax.random.uniform(k4, (1, hidden_size),
                                 jnp.float32, -bound, bound),
    }

    user_ids = np.repeat(np.arange(4, dtype=np.int64), batch // 4)   # [batch]
    sess_embedding = jax.random.normal(k5, (batch, hidden_size), jnp.float32)
    gnn_sess_embedding = jax.random.normal(k6, (batch, hidden_size), jnp.float32)

    # ---- full forward (f32 compute) -----------------------------------------
    rng = np.random.default_rng(0)   # host RNG for negative sampling / shuffle
    out, tgt = user_identificate_forward(
        user_ids, sess_embedding, gnn_sess_embedding,
        params, negative_prop, rng, tm=2048, compute_dtype=jnp.float32)
    out = jax.block_until_ready(out)
    tgt = jax.block_until_ready(tgt)
    assert out.shape == tgt.shape

    # same pairs as the forward above (identically seeded host RNG)
    total = build_pairs(user_ids, negative_prop, np.random.default_rng(0))
    a_np = np.asarray(sess_embedding)[total[:, 0]]
    b_np = np.asarray(gnn_sess_embedding)[total[:, 1]]
    ref = _reference_np(a_np, b_np, params)
    np.testing.assert_allclose(np.asarray(out), ref, rtol=1e-4, atol=1e-4)

    # ---- bf16 compute path (f32 accumulation), vs a bf16-matched reference --
    out_bf16 = encode_pairdot(total[:, :2], sess_embedding, gnn_sess_embedding,
                              params, compute_dtype=jnp.bfloat16)
    out_bf16 = jax.block_until_ready(out_bf16)
    ref_bf16 = _reference_cast(jnp.asarray(a_np), jnp.asarray(b_np),
                               params, jnp.bfloat16)
    np.testing.assert_allclose(np.asarray(out_bf16), np.asarray(ref_bf16),
                               rtol=1e-2, atol=1e-2)

    print("KERNEL_OK")
</pallas_src>

<mosaic_0001>
module attributes {stable_mosaic.version = 11 : i64} {
  func.func @_encode_rowdot_kernel(%arg0: i32, %arg1: memref<1x32x256xf32, #tpu.memory_space<vmem>>, %arg2: memref<32x32xf32, #tpu.memory_space<vmem>>, %arg3: memref<32x1xf32, #tpu.memory_space<vmem>>, %arg4: memref<32x32xf32, #tpu.memory_space<vmem>>, %arg5: memref<32x1xf32, #tpu.memory_space<vmem>>, %arg6: memref<1x128xf32, #tpu.memory_space<vmem>>) attributes {dimension_semantics = [#tpu.dimension_semantics<parallel>], iteration_bounds = array<i64: 2>, scalar_prefetch = 0 : i64, scratch_operands = 0 : i64, tpu.core_type = #tpu.core_type<tc>, window_params = [{transform_indices = @transform_0, window_bounds = array<i64: 1, 32, 256>}, {pipeline_mode = #tpu.pipeline_mode<synchronous>, transform_indices = @transform_1, window_bounds = array<i64: 32, 32>}, {pipeline_mode = #tpu.pipeline_mode<synchronous>, transform_indices = @transform_2, window_bounds = array<i64: 32, 1>}, {pipeline_mode = #tpu.pipeline_mode<synchronous>, transform_indices = @transform_3, window_bounds = array<i64: 32, 32>}, {pipeline_mode = #tpu.pipeline_mode<synchronous>, transform_indices = @transform_4, window_bounds = array<i64: 32, 1>}, {transform_indices = @transform_5, window_bounds = array<i64: 1, 128>}]} {
    %c0 = arith.constant 0 : index
    %c0_0 = arith.constant 0 : index
    %c0_1 = arith.constant 0 : index
    %0 = vector.load %arg1[%c0, %c0_0, %c0_1] : memref<1x32x256xf32, #tpu.memory_space<vmem>>, vector<1x32x256xf32>
    %1 = vector.shape_cast %0 : vector<1x32x256xf32> to vector<32x256xf32>
    %c0_2 = arith.constant 0 : index
    %c0_3 = arith.constant 0 : index
    %2 = vector.load %arg2[%c0_2, %c0_3] : memref<32x32xf32, #tpu.memory_space<vmem>>, vector<32x32xf32>
    %cst = arith.constant dense<0.000000e+00> : vector<32x256xf32>
    %3 = tpu.matmul %2, %1, %cst {dimension_numbers = #tpu.dot_dimension_numbers<[1], [0], [0], [1], [0, 0, 1, 1], [], []>} : vector<32x32xf32>, vector<32x256xf32>, vector<32x256xf32> -> vector<32x256xf32>
    %c0_4 = arith.constant 0 : index
    %c0_5 = arith.constant 0 : index
    %4 = vector.load %arg3[%c0_4, %c0_5] : memref<32x1xf32, #tpu.memory_space<vmem>>, vector<32x1xf32>
    %5 = vector.broadcast %4 : vector<32x1xf32> to vector<32x256xf32>
    %6 = arith.addf %3, %5 : vector<32x256xf32>
    %cst_6 = arith.constant 0.000000e+00 : f32
    %7 = vector.broadcast %cst_6 : f32 to vector<32x256xf32>
    %8 = arith.maximumf %6, %7 : vector<32x256xf32>
    %c0_7 = arith.constant 0 : index
    %c0_8 = arith.constant 0 : index
    %9 = vector.load %arg4[%c0_7, %c0_8] : memref<32x32xf32, #tpu.memory_space<vmem>>, vector<32x32xf32>
    %cst_9 = arith.constant dense<0.000000e+00> : vector<32x256xf32>
    %10 = tpu.matmul %9, %8, %cst_9 {dimension_numbers = #tpu.dot_dimension_numbers<[1], [0], [0], [1], [0, 0, 1, 1], [], []>} : vector<32x32xf32>, vector<32x256xf32>, vector<32x256xf32> -> vector<32x256xf32>
    %c0_10 = arith.constant 0 : index
    %c0_11 = arith.constant 0 : index
    %11 = vector.load %arg5[%c0_10, %c0_11] : memref<32x1xf32, #tpu.memory_space<vmem>>, vector<32x1xf32>
    %12 = vector.broadcast %11 : vector<32x1xf32> to vector<32x256xf32>
    %13 = arith.addf %10, %12 : vector<32x256xf32>
    %14 = vector.extract_strided_slice %13 {offsets = [0, 0], sizes = [32, 128], strides = [1, 1]} : vector<32x256xf32> to vector<32x128xf32>
    %15 = vector.extract_strided_slice %13 {offsets = [0, 128], sizes = [32, 128], strides = [1, 1]} : vector<32x256xf32> to vector<32x128xf32>
    %16 = arith.mulf %14, %15 : vector<32x128xf32>
    %cst_12 = arith.constant dense<0.000000e+00> : vector<128xf32>
    %17 = vector.multi_reduction <add>, %16, %cst_12 [0] : vector<32x128xf32> to vector<128xf32>
    %18 = vector.shape_cast %17 : vector<128xf32> to vector<1x128xf32>
    %c0_13 = arith.constant 0 : index
    %c0_14 = arith.constant 0 : index
    %19 = vector.load %arg6[%c0_13, %c0_14] : memref<1x128xf32, #tpu.memory_space<vmem>>, vector<1x128xf32>
    tpu.vector_store %arg6[%c0_13, %c0_14], %18 {strides = array<i32>} : memref<1x128xf32, #tpu.memory_space<vmem>>, vector<1x128xf32>,
    return
  }
  func.func @transform_0(%arg0: i32) -> (i32, i32, i32) {
    %c0_i32 = arith.constant 0 : i32
    %c0_i32_0 = arith.constant 0 : i32
    %c0_i32_1 = arith.constant 0 : i32
    return %arg0, %c0_i32, %c0_i32_0 : i32, i32, i32
  }
  func.func @transform_1(%arg0: i32) -> (i32, i32) {
    %c0_i32 = arith.constant 0 : i32
    %c0_i32_0 = arith.constant 0 : i32
    %c0_i32_1 = arith.constant 0 : i32
    return %c0_i32, %c0_i32_0 : i32, i32
  }
  func.func @transform_2(%arg0: i32) -> (i32, i32) {
    %c0_i32 = arith.constant 0 : i32
    %c0_i32_0 = arith.constant 0 : i32
    %c0_i32_1 = arith.constant 0 : i32
    return %c0_i32, %c0_i32_0 : i32, i32
  }
  func.func @transform_3(%arg0: i32) -> (i32, i32) {
    %c0_i32 = arith.constant 0 : i32
    %c0_i32_0 = arith.constant 0 : i32
    %c0_i32_1 = arith.constant 0 : i32
    return %c0_i32, %c0_i32_0 : i32, i32
  }
  func.func @transform_4(%arg0: i32) -> (i32, i32) {
    %c0_i32 = arith.constant 0 : i32
    %c0_i32_0 = arith.constant 0 : i32
    %c0_i32_1 = arith.constant 0 : i32
    return %c0_i32, %c0_i32_0 : i32, i32
  }
  func.func @transform_5(%arg0: i32) -> (i32, i32) {
    %c0_i32 = arith.constant 0 : i32
    %c0_i32_0 = arith.constant 0 : i32
    return %c0_i32, %arg0 : i32, i32
  }
}

</mosaic_0001>

<bundles_post_ra>
// kernel: run.1
= control target key start
LH: loop header
LB: loop body
LE: loop exit
PB: predicated region body
PF: predicated region fallthrough
CT: control target
= control target key end

     0   :  { %10 = vsyncpa [#allocation3], 0  ;;  %s917_s0 = inlined_call_operand.vmem [shape: f32[2,32,256], index: 0, kind: input, shape index: {}]   ;;  %s918_s1 = inlined_call_operand.vmem [shape: f32[32,32], index: 1, kind: input, shape index: {}]   ;;  %s919_s2 = inlined_call_operand.vmem [shape: f32[32,1], index: 2, kind: input, shape index: {}]   ;;  %s920_s3 = inlined_call_operand.vmem [shape: f32[32,32], index: 3, kind: input, shape index: {}]   ;;  %s921_s4 = inlined_call_operand.vmem [shape: f32[32,1], index: 4, kind: input, shape index: {}]   ;;  %s922_s5 = inlined_call_operand.hbm [shape: f32[1,256], index: 5, kind: output, shape index: {}]  }
   0x1   :  { %12 = vsyncpa [#allocation3 + $0x1], 0  ;;  %s753_s18 = smov 0   ;;  %s755_s19 = smov 0  }
   0x2   :  { %s757_s20 = smov 0   ;;  %s759_s21 = smov 0  }
   0x3 LB: > { %s774_s22 = sadd.s32 4294967295, %s718_s21   ;;  %s579_s23 = sadd.s32 4294967294, %s718_s21   ;;  %s718_s21 = sphi %s759_s21, %s928_s21   ;;  %s714_s20 = sphi %s757_s20, %s927_s20   ;;  %s710_s19 = sphi %s755_s19, %s926_s19   ;;  %s706_s18 = sphi %s753_s18, %s925_s18  }
   0x4   : > { %s778_s24 = sadd.s32 1, %s718_s21   ;;  %s135_s25 = sadd.s32 1, %s714_s20 }
   0x5   : > { %s132_s26 = ssub.s32 %s718_s21, %s778_s24  ;;  %p145_p0 = scmp.ne.s32.totalorder %s714_s20, %s710_s19 }
   0x6   : > { %p133_p1 = scmp.eq.s32.totalorder %s132_s26, 0  ;;  %p146_p2 = scmp.eq.s32.totalorder %s774_s22, 1 }
   0x7   : > { %p151_p3 = scmp.ne.s32.totalorder %s710_s19, %s706_s18  ;;  %p152_p4 = scmp.eq.s32.totalorder %s579_s23, 1 }
   0x8   : > { %s789_s27 = scalar_select %p133_p1, %s714_s20, %s135_s25  }
   0x9   : > { %p791_p5 = por %p146_p2, %p145_p0  ;;  %p795_p6 = por %p152_p4, %p151_p3 }
   0xa   : > { %p582_p7 = scmp.ge.s32.totalorder %s718_s21, 1  ;;  %p190_p8 = scmp.lt.s32.totalorder %s718_s21, 3 }
   0xc   : > { %p191_p9 = pnand %p582_p7, %p190_p8 }
   0xd   : > { %p217_p10 = scmp.lt.s32.totalorder (!%p191_p9), %s774_s22, 1  ;;  %v720_v0 = vmov (!%p191_p9), 0.0   ;;  %v234_v1 = vld [vmem:[%s919_s2] sm:$0xff] (!%p191_p9)  ;;  %v236_v2 = vld [vmem:[%s919_s2 + $0x10] sm:$0xff] (!%p191_p9)  ;;  %v721_v3 = vmov (!%p191_p9), 0   ;;  %v235_v4 = vld [vmem:[%s919_s2 + $0x8] sm:$0xff] (!%p191_p9) }
   0xe   : > { %194 = sbr.rel (%p191_p9) target bundleno = 528 (0x210), region = 40  ;;  %335 = vmatprep.mubr.f32.mxu0 (!%p191_p9), %v720_v0  ;;  %472 = vmatprep.mubr.f32.mxu1 (!%p191_p9), %v720_v0  ;;  %v237_v5 = vld [vmem:[%s919_s2 + $0x18] sm:$0xff] (!%p191_p9)  ;;  %v372_v17 = vld [vmem:[%s921_s4] sm:$0xff] (!%p191_p9)  ;;  %v373_v18 = vld [vmem:[%s921_s4 + $0x8] sm:$0xff] (!%p191_p9)  ;;  %vm258_vm0 = vcmask (!%p191_p9), 261120   ;;  %s593_s11 = sshll.u32 (!%p191_p9), %s774_s22, 4 }
   0xf   : > { %654 = vset.pattern.permute.xlu0 (!%p191_p9), %v721_v3  ;;  %655 = vset.pattern.permute.xlu1 (!%p191_p9), %v721_v3  ;;  %v374_v20 = vld [vmem:[%s921_s4 + $0x10] sm:$0xff] (!%p191_p9)  ;;  %v375_v21 = vld [vmem:[%s921_s4 + $0x18] sm:$0xff] (!%p191_p9)  ;;  %v230_v22 = vld [vmem:[%s918_s1] sm:$0xff] (!%p191_p9)  ;;  %s875_s16 = scalar_lea.hbm (!%p191_p9), %s922_s5, %s593_s11 }
  0x10   : > { %240 = vperm.xlu0 (!%p191_p9), %654, %v234_v1   ;;  %250 = vperm.xlu1 (!%p191_p9), %655, %v236_v2   ;;  %v231_v23 = vld [vmem:[%s918_s1 + $0x8] sm:$0xff] (!%p191_p9)  ;;  %v232_v24 = vld [vmem:[%s918_s1 + $0x10] sm:$0xff] (!%p191_p9)  ;;  %v233_v25 = vld [vmem:[%s918_s1 + $0x18] sm:$0xff] (!%p191_p9) }
  0x11   : > { %v368_v58 = vld [vmem:[%s920_s3] sm:$0xff] (!%p191_p9)  ;;  %v369_v59 = vld [vmem:[%s920_s3 + $0x8] sm:$0xff] (!%p191_p9)  ;;  %v370_v60 = vld [vmem:[%s920_s3 + $0x10] sm:$0xff] (!%p191_p9) }
  0x12   : > { %v371_v61 = vld [vmem:[%s920_s3 + $0x18] sm:$0xff] (!%p191_p9) }
  0x14   : > { %245 = vperm.xlu0 (!%p191_p9), %654, %v235_v4   ;;  %255 = vperm.xlu1 (!%p191_p9), %655, %v237_v5  }
  0x15   : > { %s218_s9 = scalar_select %p217_p10, %s774_s22, 1 }
  0x16   : > { %s722_s22 = smov [#allocation2]  }
  0x17   : > { %s596_s10 = sshll.u32 %s218_s9, 6  ;;  %s660_s25 = sshll.u32 %s722_s22, 4  ;;  %s661_s25 = int_to_ptr.vmem [resolvable:$false] %s660_s25 }
  0x18   : > { %s221_s17 = scalar_lea.vmem %s917_s0, %s596_s10  ;;  %378 = vperm.xlu0 %654, %v372_v17   ;;  %383 = vperm.xlu1 %655, %v373_v18   ;;  %s215_s10 = sand.u32 1, %s710_s19  }
  0x19   : > { %v223_v6 = vld [vmem:[%s221_s17 + $0x8] sm:$0xff]  ;;  %v225_v7 = vld [vmem:[%s221_s17 + $0x18] sm:$0xff]  ;;  %v222_v8 = vld [vmem:[%s221_s17] sm:$0xff]  ;;  %s216_s12 = scalar_lea.vmem [#allocation2], %s215_s10  ;;  %s662_s26 = scalar_lea.vmem %s661_s25, 32 }
  0x1a   : > { %v597_v9 = vpack.c.bf16 %v225_v7, %v223_v6  ;;  %v224_v10 = vld [vmem:[%s221_s17 + $0x10] sm:$0xff]  ;;  %v227_v11 = vld [vmem:[%s221_s17 + $0x28] sm:$0xff]  ;;  %v229_v12 = vld [vmem:[%s221_s17 + $0x38] sm:$0xff]  ;;  %s524_s13 = sshll.u32 %s216_s12, 4  ;;  %s877_s13 = int_to_ptr.vmem [resolvable:$true] %s524_s13 }
  0x1b   : > { %v599_v13 = vpack.c.bf16 %v224_v10, %v222_v8  ;;  %v601_v14 = vpack.c.bf16 %v229_v12, %v227_v11  ;;  %v226_v15 = vld [vmem:[%s221_s17 + $0x20] sm:$0xff]  ;;  %v228_v16 = vld [vmem:[%s221_s17 + $0x30] sm:$0xff]  ;;  %s512_s17 = scalar_lea.sflag [#allocation3], %s215_s10  ;;  %s656_s23 = scalar_lea.vmem %s877_s13, 16 }
  0x1c   : > { %598 = vmatprep.subr.bf16.mxu0 %v597_v9  ;;  %v603_v19 = vpack.c.bf16 %v228_v16, %v226_v15  ;;  %388 = vperm.xlu0 %654, %v374_v20   ;;  %p657_p11 = scmp.ne.s32.totalorder %s877_s13, %s656_s23  ;;  %p663_p0 = scmp.lt.s32.totalorder %s877_s13, %s661_s25 }
  0x1d   : > { %600 = vmatpush1.bf16.msra.mxu0 %v599_v13  ;;  %393 = vperm.xlu1 %655, %v375_v21   ;;  %p664_p1 = scmp.lt.s32.totalorder %s662_s26, %s656_s23 }
  0x1e   : > { %602 = vmatprep.subr.bf16.mxu0 %v601_v14  ;;  %p658_p12 = pnand %p657_p11, %p791_p5 }
  0x1f   : > { %p665_p2 = por %p664_p1, %p663_p0 }
  0x20   : > { %p659_p13 = pneg %p658_p12 }
  0x21   : > { %604 = vmatpush1.bf16.msra.mxu0 %v603_v19 }
  0x22   : > { %p666_p3 = pnand %p665_p2, %p659_p13 }
  0x24   : > { %585 = vmatmul.mubr.msk.f32.vlgmr.msra.gmra.mrb[0].mxu0 %vm258_vm0, %v230_v22 }
  0x25   : > { %341 = vmatprep.mubr.f32.mxu0 %v720_v0 }
  0x28   : > { %586 = vmatmul.mubr.msk.f32.gmra.mrb[2].mxu0 %vm258_vm0, %v231_v23 }
  0x29   : > { %347 = vmatprep.mubr.f32.mxu0 %v720_v0 }
  0x2c   : > { %587 = vmatmul.mubr.msk.f32.gmra.mrb[4].mxu0 %vm258_vm0, %v232_v24 }
  0x2d   : > { %353 = vmatprep.mubr.f32.mxu0 %v720_v0 }
  0x30   : > { %588 = vmatmul.mubr.msk.f32.gmra.mrb[6].mxu0 %vm258_vm0, %v233_v25 }
  0x8f   : > { %v241_v26 = vpop.permute.xlu0 %240  ;;  %v251_v35 = vpop.permute.xlu1 %250 }
  0x93   : > { %v246_v30 = vpop.permute.xlu0 %245  ;;  %v256_v46 = vpop.permute.xlu1 %255 }
  0x97   : > { %v379_v62 = vpop.permute.xlu0 %378  ;;  %v384_v4 = vpop.permute.xlu1 %383 }
  0x9b   : > { %v389_v10 = vpop.permute.xlu0 %388 }
  0x9c   : > { %v394_v16 = vpop.permute.xlu1 %393 }
  0xf7   : > { %v337_v27 = vpop.f32.mrb[0].mxu0 }
  0xf8   : > { %v339_v28 = vpop.f32.mrb[1].mxu0  ;;  %v338_v29 = vadd.f32 %v337_v27, %v241_v26 }
  0xf9   : > { %v340_v31 = vadd.f32 %v339_v28, %v241_v26 }
  0xfa   : > { %v360_v37 = vmax.f32 %v338_v29, 0.0 }
  0xfb   : > { %v343_v32 = vpop.f32.mrb[2].mxu0  ;;  %v361_v39 = vmax.f32 %v340_v31, 0.0 }
  0xfc   : > { %v344_v33 = vadd.f32 %v343_v32, %v246_v30  ;;  %v345_v34 = vpop.f32.mrb[3].mxu0 }
  0xfd   : > { %v346_v36 = vadd.f32 %v345_v34, %v246_v30 }
  0xfe   : > { %v362_v38 = vmax.f32 %v344_v33, 0.0 }
  0xff   : > { %v363_v40 = vmax.f32 %v346_v36, 0.0  ;;  %v349_v41 = vpop.f32.mrb[4].mxu0 }
 0x100   : > { %v351_v42 = vpop.f32.mrb[5].mxu0  ;;  %v607_v43 = vpack.c.bf16 %v362_v38, %v360_v37  ;;  %v350_v45 = vadd.f32 %v349_v41, %v251_v35 }
 0x101   : > { %v605_v44 = vpack.c.bf16 %v363_v40, %v361_v39  ;;  %v352_v47 = vadd.f32 %v351_v42, %v251_v35 }
 0x102   : > { %v364_v52 = vmax.f32 %v350_v45, 0.0 }
 0x103   : > { %v355_v48 = vpop.f32.mrb[6].mxu0  ;;  %606 = vmatprep.subr.bf16.mxu1 %v605_v44  ;;  %v365_v54 = vmax.f32 %v352_v47, 0.0 }
 0x104   : > { %v356_v49 = vadd.f32 %v355_v48, %v256_v46  ;;  %v357_v50 = vpop.f32.mrb[7].mxu0  ;;  %608 = vmatpush1.bf16.msra.mxu1 %v607_v43 }
 0x105   : > { %v358_v51 = vadd.f32 %v357_v50, %v256_v46 }
 0x106   : > { %v366_v53 = vmax.f32 %v356_v49, 0.0 }
 0x107   : > { %v367_v55 = vmax.f32 %v358_v51, 0.0 }
 0x108   : > { %v611_v56 = vpack.c.bf16 %v366_v53, %v364_v52 }
 0x109   : > { %v609_v57 = vpack.c.bf16 %v367_v55, %v365_v54 }
 0x10b   : > { %610 = vmatprep.subr.bf16.mxu1 %v609_v57 }
 0x10c   : > { %612 = vmatpush1.bf16.msra.mxu1 %v611_v56 }
 0x10f   : > { %589 = vmatmul.mubr.msk.f32.vlgmr.msra.gmra.mrb[0].mxu1 %vm258_vm0, %v368_v58 }
 0x110   : > { %478 = vmatprep.mubr.f32.mxu1 %v720_v0 }
 0x113   : > { %590 = vmatmul.mubr.msk.f32.gmra.mrb[2].mxu1 %vm258_vm0, %v369_v59 }
 0x114   : > { %484 = vmatprep.mubr.f32.mxu1 %v720_v0 }
 0x117   : > { %591 = vmatmul.mubr.msk.f32.gmra.mrb[4].mxu1 %vm258_vm0, %v370_v60 }
 0x118   : > { %490 = vmatprep.mubr.f32.mxu1 %v720_v0 }
 0x11b   : > { %592 = vmatmul.mubr.msk.f32.gmra.mrb[6].mxu1 %vm258_vm0, %v371_v61 }
 0x1e2   : > { %v474_v63 = vpop.f32.mrb[0].mxu1 }
 0x1e3   : > { %v475_v1 = vadd.f32 %v474_v63, %v379_v62  ;;  %v476_v2 = vpop.f32.mrb[1].mxu1 }
 0x1e4   : > { %v477_v3 = vadd.f32 %v476_v2, %v379_v62 }
 0x1e6   : > { %v497_v5 = vmul.f32 %v477_v3, %v475_v1  ;;  %v480_v6 = vpop.f32.mrb[2].mxu1 }
 0x1e7   : > { %v481_v7 = vadd.f32 %v480_v6, %v384_v4  ;;  %v482_v8 = vpop.f32.mrb[3].mxu1 }
 0x1e8   : > { %v483_v9 = vadd.f32 %v482_v8, %v384_v4 }
 0x1ea   : > { %v498_v11 = vmul.f32 %v483_v9, %v481_v7  ;;  %v486_v0 = vpop.f32.mrb[4].mxu1 }
 0x1eb   : > { %v487_v12 = vadd.f32 %v486_v0, %v389_v10  ;;  %v488_v13 = vpop.f32.mrb[5].mxu1 }
 0x1ec   : > { %v501_v14 = vadd.f32 %v498_v11, %v497_v5  ;;  %v489_v15 = vadd.f32 %v488_v13, %v389_v10 }
 0x1ee   : > { %v499_v17 = vmul.f32 %v489_v15, %v487_v12  ;;  %v492_v18 = vpop.f32.mrb[6].mxu1 }
 0x1ef   : > { %v493_v19 = vadd.f32 %v492_v18, %v394_v16  ;;  %v494_v20 = vpop.f32.mrb[7].mxu1 }
 0x1f0   : > { %v502_v21 = vadd.f32 %v501_v14, %v499_v17  ;;  %v495_v22 = vadd.f32 %v494_v20, %v394_v16 }
 0x1f2   : > { %v500_v23 = vmul.f32 %v495_v22, %v493_v19 }
 0x1f4   : > { %v503_v24 = vadd.f32 %v502_v21, %v500_v23 }
 0x1f6   : > { %v504_v25 = vrot.slane %v503_v24, 4 }
 0x1f8   : > { %v505_v26 = vadd.f32 %v504_v25, %v503_v24 }
 0x1fa   : > { %v506_v27 = vrot.slane %v505_v26, 2 }
 0x1fc   : > { %v507_v28 = vadd.f32 %v506_v27, %v505_v26 }
 0x1fe   : > { %v508_v29 = vrot.slane %v507_v28, 1 }
 0x200   : > { %v509_v30 = vadd.f32 %v508_v29, %v507_v28 }
 0x202   : > { %510 = vst [vmem:[%s216_s12] sm:$0x1] %v509_v30 }
 0x203   : > { %669 = shalt.err (!%p666_p3)
}
 0x204   : > { %s670_s30 = scalar_lea.hbm %s875_s16, 16  ;;  %s674_s8 = scalar_lea.hbm %s922_s5, 32 }
 0x205   : > { %p671_p4 = scmp.ne.s32.totalorder %s875_s16, %s670_s30  ;;  %p675_p9 = scmp.lt.u32.totalorder %s875_s16, %s922_s5 }
 0x206   : > { %p676_p10 = scmp.lt.u32.totalorder %s674_s8, %s670_s30  ;;  %p678_p12 = scmp.lt.u32.totalorder %s670_s30, %s875_s16 }
 0x207   : > { %p672_p7 = pnand %p671_p4, %p791_p5 }
 0x208   : > { %p677_p11 = por %p676_p10, %p675_p9 }
 0x209   : > { %p673_p8 = pneg %p672_p7 }
 0x20a   : > { %p679_p13 = por %p678_p12, %p677_p11 }
 0x20c   : > { %p680_p0 = pnand %p679_p13, %p673_p8 }
 0x20e   : > { %683 = shalt.err (!%p680_p0)
}
 0x20f   : > { %613 = dma.vmem_to_hbm [thread:$0]  (%p791_p5), %s877_s13, 16, %s875_s16, %s512_s17  }
 0x210 PF: > { %p619_p1 = scmp.ge.s32.totalorder %s718_s21, 2  ;;  %s536_s11 = sand.u32 1, %s706_s18  }
 0x211   : > { %s537_s12 = scalar_lea.sflag [#allocation3], %s536_s11 }
 0x212   : > { %p616_p2 = pnand %p619_p1, %p795_p6 }
 0x214   : > { %701 = dma.done.wait (!%p616_p2), %s537_s12, 16  }
 0x215   : > { %703 = vsyncadd (!%p616_p2), %s537_s12, 4294967280  ;;  %p15_p3 = scmp.ge.s32.totalorder %s778_s24, 4   ;;  %s925_s18 = smov %s710_s19 }
 0x216   : > { %s926_s19 = smov %s714_s20  ;;  %s927_s20 = smov %s789_s27 }
 0x217   : > { %s928_s21 = smov %s778_s24  ;;  %17 = sbr.rel (!%p15_p3) target bundleno = 3 (0x3), region = 75 }
 0x21e   :  { %541 = vsyncpa [#allocation3], 1 }
 0x21f   :  { %543 = vsyncpa [#allocation3 + $0x1], 1 }

</bundles_post_ra>
